<compile_context>
chip_gen: v7x
topology: tpu7x:2x2x1
jax: 0.10.0
libtpu: 0.0.40
codegen_flags: <defaults>
</compile_context>

<pallas_src>
import functools

import jax
import jax.numpy as jnp
from jax.experimental import pallas as pl
from jax.experimental.pallas import tpu as pltpu


def _identity_kernel(x_ref, o_ref):
    # Whole-tile load -> store.  Pure data movement; DMA/HBM-bound, so the
    # only levers are block size (pipelining depth) and lane-dense stores.
    o_ref[...] = x_ref[...]


def _sublane_quantum(dtype) -> int:
    # Minimum sublane tile per packed dtype (f32:8, bf16:16, int8/fp8:32).
    itemsize = jnp.dtype(dtype).itemsize
    return {4: 8, 2: 16, 1: 32}.get(itemsize, 8)


@functools.partial(jax.jit, static_argnames=("block_bytes", "skip_kernel"))
def template_model_forward(x_nchw, *, block_bytes: int = 2 * 1024 * 1024,
                           skip_kernel: bool = False):
    """Pallas 'forward' for TemplateModel.

    The PyTorch forward is a no-op; this streams the input through VMEM
    unchanged and returns it (instead of None) so the result is inspectable.
    Set skip_kernel=True for the zero-cost path (return the input directly).
    """
    if skip_kernel:
        # Fastest possible "implementation" of a no-op forward.
        return x_nchw

    B, C, H, W = x_nchw.shape
    dtype = x_nchw.dtype
    itemsize = jnp.dtype(dtype).itemsize

    # ---- Lane-dense 2-D factorization: cols should be a multiple of 128 so
    #      stores are unmasked vst (biggest single lever for a copy kernel). --
    rows, cols = B * C, H * W
    if cols % 128 != 0:
        total = rows * cols
        cols = total                      # fallback: single full-extent row
        cap = min(total, 65536)
        for cand in range(cap - (cap % 128), 0, -128):
            if total % cand == 0:
                cols = cand
                break
        rows = total // cols
    x2d = x_nchw.reshape(rows, cols)

    # ---- Row tiling: cap the block at ~block_bytes, keep it a multiple of
    #      the sublane quantum, and make it evenly divide rows (no ragged
    #      trailing tile / no masked partial stores). ------------------------
    q = _sublane_quantum(dtype)
    bytes_per_row = cols * itemsize
    budget_rows = max(1, block_bytes // bytes_per_row)
    block_rows = (budget_rows // q) * q
    if block_rows <= 0 or block_rows >= rows or rows % q != 0:
        block_rows = rows                 # full-extent block is always legal
    else:
        while rows % block_rows != 0:
            block_rows -= q

    grid = (rows // block_rows,)

    out2d = pl.pallas_call(
        _identity_kernel,
        out_shape=jax.ShapeDtypeStruct((rows, cols), dtype),
        grid_spec=pltpu.PrefetchScalarGridSpec(
            num_scalar_prefetch=0,
            grid=grid,
            in_specs=[pl.BlockSpec((block_rows, cols), lambda i: (i, 0))],
            out_specs=pl.BlockSpec((block_rows, cols), lambda i: (i, 0)),
        ),
        # Output aliases the input buffer: removes the extra HBM allocation
        # for the no-op path (XLA handles the aliasing at the custom call).
        input_output_aliases={0: 0},
        compiler_params=pltpu.CompilerParams(
            # Independent row-tiles: shard across TensorCores on multi-TC chips.
            dimension_semantics=("parallel",),
        ),
    )(x2d)

    return out2d.reshape(B, C, H, W)


if __name__ == "__main__":
    key = jax.random.PRNGKey(0)
    # Small NCHW input consistent with an image-upscaler template.
    x = jax.random.normal(key, (2, 4, 16, 16), dtype=jnp.float32)

    y = template_model_forward(x)
    y = jax.block_until_ready(y)

    # Identity pass-through sanity check.
    assert y.shape == x.shape
    assert y.dtype == x.dtype
    assert bool(jnp.allclose(y, x))

    # Zero-cost path sanity check.
    y2 = jax.block_until_ready(template_model_forward(x, skip_kernel=True))
    assert bool(jnp.allclose(y2, x))

    print("KERNEL_OK")
</pallas_src>

<mosaic_0001>
module attributes {stable_mosaic.version = 11 : i64} {
  func.func @_identity_kernel(%arg0: i32, %arg1: memref<8x256xf32, #tpu.memory_space<vmem>>, %arg2: memref<8x256xf32, #tpu.memory_space<vmem>>) attributes {dimension_semantics = [#tpu.dimension_semantics<parallel>], iteration_bounds = array<i64: 1>, scalar_prefetch = 0 : i64, scratch_operands = 0 : i64, tpu.core_type = #tpu.core_type<tc>, window_params = [{transform_indices = @transform_0, window_bounds = array<i64: 8, 256>}, {transform_indices = @transform_1, window_bounds = array<i64: 8, 256>}]} {
    %c0 = arith.constant 0 : index
    %c0_0 = arith.constant 0 : index
    %0 = vector.load %arg1[%c0, %c0_0] : memref<8x256xf32, #tpu.memory_space<vmem>>, vector<8x256xf32>
    %c0_1 = arith.constant 0 : index
    %c0_2 = arith.constant 0 : index
    %1 = vector.load %arg2[%c0_1, %c0_2] : memref<8x256xf32, #tpu.memory_space<vmem>>, vector<8x256xf32>
    tpu.vector_store %arg2[%c0_1, %c0_2], %0 {strides = array<i32>} : memref<8x256xf32, #tpu.memory_space<vmem>>, vector<8x256xf32>,
    return
  }
  func.func @transform_0(%arg0: i32) -> (i32, i32) {
    %c0_i32 = arith.constant 0 : i32
    %c0_i32_0 = arith.constant 0 : i32
    return %arg0, %c0_i32 : i32, i32
  }
  func.func @transform_1(%arg0: i32) -> (i32, i32) {
    %c0_i32 = arith.constant 0 : i32
    %c0_i32_0 = arith.constant 0 : i32
    return %arg0, %c0_i32 : i32, i32
  }
}

</mosaic_0001>

<bundles_post_ra>
// kernel: template_model_forward.1
= control target key start
LH: loop header
LB: loop body
LE: loop exit
PB: predicated region body
PF: predicated region fallthrough
CT: control target
= control target key end

     0   :  { %s38_s0 = inlined_call_operand.vmem [shape: f32[8,256], index: 0, kind: input, shape index: {}, may-alias: {0,1}]   ;;  %s39_s1 = inlined_call_operand.vmem [shape: f32[8,256], index: 1, kind: output, shape index: {}, may-alias: {0,1}]  }
   0x1   :  { %v8_v0 = vld [vmem:[%s38_s0] sm:$0xff]  ;;  %v9_v1 = vld [vmem:[%s38_s0 + $0x8] sm:$0xff] }
   0x2   :  { %10 = vst [vmem:[%s39_s1] sm:$0xff] %v8_v0  ;;  %11 = vst [vmem:[%s39_s1 + $0x8] sm:$0xff] %v9_v1 }

</bundles_post_ra>
